<compile_context>
chip_gen: v6e
topology: v6e:2x2x1
jax: 0.10.0
libtpu: 0.0.40
codegen_flags: <defaults>
</compile_context>

<pallas_src>
import jax
import jax.numpy as jnp
from jax.experimental import pallas as pl
from jax.experimental.pallas import tpu as pltpu


TILE_I = 128   # destination-node rows per grid step (mult of 32 for int8 tiling)
TILE_J = 128   # source-node columns per grid step (mult of 128, lane axis)


def _round_up(n, m):
    return ((n + m - 1) // m) * m


def gat_conv_kernel(a_dst_ref, a_src_ref, h_src_ref, adj_ref, bias_ref,
                    out_ref, m_sc, l_sc, acc_sc):
    # a_dst: [TILE_I, 1]   a_src / h_src: [1, TILE_J]   adj: [TILE_I, TILE_J] int8
    # bias: [1, 1] scalar in SMEM
    # m/l/acc scratch: [TILE_I, 1] f32, persistent across the j (source) axis.
    j = pl.program_id(1)

    @pl.when(j == 0)
    def _():
        m_sc[...] = jnp.full_like(m_sc, -jnp.inf)
        l_sc[...] = jnp.zeros_like(l_sc)
        acc_sc[...] = jnp.zeros_like(acc_sc)

    # e[i, jj] = LeakyReLU(att_dst*h[i] + att_src*h[jj]), slope 0.2.
    # The att_* products are precomputed (hoisted) wrapper-side.
    e = a_dst_ref[...] + a_src_ref[...]                       # [TILE_I, TILE_J]
    e = jnp.maximum(e, 0.2 * e)                               # LeakyReLU, 1 op cheaper

    # Single mask application: non-edges -> -1e30.  After the running-max shift
    # exp(-1e30 - m) underflows to exactly 0.  A transiently fully-masked column
    # block only pollutes m/l/acc until the first real edge (guaranteed by the
    # self loop) arrives, at which point the exp(m_prev - m_new) rescale zeroes
    # the garbage out — so no post-exp mask is needed.
    e = jnp.where(adj_ref[...] != 0, e, jnp.float32(-1e30))

    m_prev = m_sc[...]
    m_new = jnp.maximum(m_prev, jnp.max(e, axis=-1, keepdims=True))
    rescale = jnp.exp(m_prev - m_new)                         # [TILE_I, 1]
    p = jnp.exp(e - m_new)                                    # [TILE_I, TILE_J]

    l_sc[...] = rescale * l_sc[...] + jnp.sum(p, axis=-1, keepdims=True)
    # Aggregation (output width 1): VPU multiply + lane reduction, not a
    # degenerate MXU matmul.
    acc_sc[...] = rescale * acc_sc[...] + jnp.sum(
        p * h_src_ref[...], axis=-1, keepdims=True)
    m_sc[...] = m_new

    @pl.when(j == pl.num_programs(1) - 1)
    def _():
        # Deferred normalization + bias.  Exact reciprocal keeps the f32
        # reference tolerance (1e-4 / 1e-5).
        out_ref[...] = (acc_sc[...] * pl.reciprocal(l_sc[...], approx=False)
                        + bias_ref[0, 0])


def build_adjacency(edge_index, num_nodes):
    """Dense int8 adjacency, adj[i, j] = 1 iff edge j -> i, plus self loops.

    Built once per graph (NOT in the per-call hot path).  Padded to a multiple
    of TILE_I / TILE_J; padding rows only carry their own self loop so the
    per-row softmax stays well defined, and padding columns are all zero so
    they never contribute to real rows.  INVARIANT: every row (including
    padding) has at least one set entry — the in-kernel -1e30 masking relies
    on it.
    """
    n_pad = _round_up(num_nodes, max(TILE_I, TILE_J))
    src = edge_index[0]
    dst = edge_index[1]
    adj = jnp.zeros((n_pad, n_pad), dtype=jnp.int8)
    adj = adj.at[dst, src].set(1)
    diag = jnp.arange(n_pad)
    adj = adj.at[diag, diag].set(1)
    return adj


def gat_forward(x, adj, params):
    """x: [N, C] f32, adj: [Np, Np] int8 (precomputed). Returns [N, 1] f32."""
    n, c = x.shape
    n_pad = adj.shape[0]
    if n_pad != n:
        x = jnp.pad(x, ((0, n_pad - n), (0, 0)))

    # Hoisted linear transform (wrapper-side matvec): the kernel never sees x.
    h = x @ params["w"][0]                                         # [Np]
    a_src_row = (params["att_src"][0, 0] * h).reshape(1, n_pad)    # lane-dense
    h_row = h.reshape(1, n_pad)                                    # lane-dense
    a_dst_col = (params["att_dst"][0, 0] * h).reshape(n_pad, 1)

    grid = (n_pad // TILE_I, n_pad // TILE_J)
    smem = pl.BlockSpec(memory_space=pltpu.MemorySpace.SMEM)

    cost = pl.CostEstimate(
        flops=8 * n_pad * n_pad,            # ~per-element VALU work on the plane
        transcendentals=n_pad * n_pad,      # one exp per adjacency element
        bytes_accessed=n_pad * n_pad + 16 * n_pad,  # int8 mask + small vectors
    )

    out = pl.pallas_call(
        gat_conv_kernel,
        out_shape=jax.ShapeDtypeStruct((n_pad, 1), jnp.float32),
        grid=grid,
        in_specs=[
            pl.BlockSpec((TILE_I, 1), lambda i, j: (i, 0)),       # att_dst * h
            pl.BlockSpec((1, TILE_J), lambda i, j: (0, j)),       # att_src * h
            pl.BlockSpec((1, TILE_J), lambda i, j: (0, j)),       # h (sources)
            pl.BlockSpec((TILE_I, TILE_J), lambda i, j: (i, j)),  # adj (int8)
            smem,                                                 # bias [1,1]
        ],
        out_specs=pl.BlockSpec((TILE_I, 1), lambda i, j: (i, 0)),
        scratch_shapes=[pltpu.VMEM((TILE_I, 1), jnp.float32),     # running max
                        pltpu.VMEM((TILE_I, 1), jnp.float32),     # running denom
                        pltpu.VMEM((TILE_I, 1), jnp.float32)],    # running numer
        compiler_params=pltpu.CompilerParams(
            dimension_semantics=("parallel", "arbitrary"),
            vmem_limit_bytes=64 << 20),
        cost_estimate=cost,
    )(a_dst_col, a_src_row, h_row, adj, params["bias"])
    return out[:n]


def init_params(key, in_channels):
    # GATConv(in_channels, 1, heads=1): lin weight [1, in_channels],
    # att_src [1, 1, 1] -> (1,1), att_dst -> (1,1), bias [1] (zero-init in PyG).
    k_w, k_as, k_ad = jax.random.split(key, 3)
    return {
        "w": jax.random.normal(k_w, (1, in_channels), dtype=jnp.float32) * 0.1,
        "att_src": jax.random.normal(k_as, (1, 1), dtype=jnp.float32) * 0.1,
        "att_dst": jax.random.normal(k_ad, (1, 1), dtype=jnp.float32) * 0.1,
        "bias": jnp.zeros((1, 1), dtype=jnp.float32),
    }


def gat_reference(x, adj_nn, params):
    """Pure-JAX reference (same math, unpadded) for a correctness check."""
    h = x @ params["w"].T                                            # [N, 1]
    e = h * params["att_dst"][0, 0] + (h * params["att_src"][0, 0]).T
    e = jnp.where(e > 0, e, 0.2 * e)
    e = jnp.where(adj_nn > 0, e, -jnp.inf)
    alpha = jax.nn.softmax(e, axis=-1)
    return alpha @ h + params["bias"][0, 0]


if __name__ == "__main__":
    key = jax.random.PRNGKey(0)
    k_x, k_p = jax.random.split(key)

    N, C = 16, 8
    x = jax.random.normal(k_x, (N, C), dtype=jnp.float32)

    # Deterministic ring graph, both directions: edge_index [2, 2N]
    idx = jnp.arange(N, dtype=jnp.int32)
    nxt = (idx + 1) % N
    edge_index = jnp.stack(
        [jnp.concatenate([idx, nxt]), jnp.concatenate([nxt, idx])], axis=0
    )  # [2, 32]

    params = init_params(k_p, C)

    # Adjacency is graph-static: build it ONCE, outside the per-call path.
    adj = build_adjacency(edge_index, N)

    out = gat_forward(x, adj, params)
    jax.block_until_ready(out)

    assert out.shape == (N, 1) and out.dtype == jnp.float32
    ref = gat_reference(x, adj[:N, :N].astype(jnp.float32), params)
    assert bool(jnp.all(jnp.isfinite(out)))
    assert bool(jnp.allclose(out, ref, rtol=1e-4, atol=1e-5))
    print("KERNEL_OK")
</pallas_src>

<mosaic_0001>
module attributes {stable_mosaic.version = 11 : i64} {
  func.func @gat_conv_kernel(%arg0: i32, %arg1: i32, %arg2: memref<128x1xf32, #tpu.memory_space<vmem>>, %arg3: memref<1x128xf32, #tpu.memory_space<vmem>>, %arg4: memref<1x128xf32, #tpu.memory_space<vmem>>, %arg5: memref<128x128xi8, #tpu.memory_space<vmem>>, %arg6: memref<1x1xf32, #tpu.memory_space<smem>>, %arg7: memref<128x1xf32, #tpu.memory_space<vmem>>, %arg8: memref<128x1xf32, #tpu.memory_space<vmem>>, %arg9: memref<128x1xf32, #tpu.memory_space<vmem>>, %arg10: memref<128x1xf32, #tpu.memory_space<vmem>>) attributes {dimension_semantics = [#tpu.dimension_semantics<parallel>, #tpu.dimension_semantics<arbitrary>], iteration_bounds = array<i64: 1, 1>, scalar_prefetch = 0 : i64, scratch_operands = 3 : i64, tpu.core_type = #tpu.core_type<tc>, window_params = [{transform_indices = @transform_0, window_bounds = array<i64: 128, 1>}, {transform_indices = @transform_1, window_bounds = array<i64: 1, 128>}, {transform_indices = @transform_2, window_bounds = array<i64: 1, 128>}, {transform_indices = @transform_3, window_bounds = array<i64: 128, 128>}, {transform_indices = @transform_4, window_bounds = array<i64: 1, 1>}, {transform_indices = @transform_5, window_bounds = array<i64: 128, 1>}]} {
    %c0_i32 = arith.constant 0 : i32
    %0 = arith.cmpi eq, %arg1, %c0_i32 : i32
    %1 = arith.extui %0 : i1 to i32
    %c0_i32_0 = arith.constant 0 : i32
    %2 = arith.cmpi ne, %1, %c0_i32_0 : i32
    scf.if %2 {
      %cst_26 = arith.constant 0xFF800000 : f32
      %44 = vector.broadcast %cst_26 : f32 to vector<128x1xf32>
      %c0_27 = arith.constant 0 : index
      %c0_28 = arith.constant 0 : index
      %45 = vector.load %arg8[%c0_27, %c0_28] : memref<128x1xf32, #tpu.memory_space<vmem>>, vector<128x1xf32>
      tpu.vector_store %arg8[%c0_27, %c0_28], %44 {strides = array<i32>} : memref<128x1xf32, #tpu.memory_space<vmem>>, vector<128x1xf32>,
      %cst_29 = arith.constant 0.000000e+00 : f32
      %46 = vector.broadcast %cst_29 : f32 to vector<128x1xf32>
      %c0_30 = arith.constant 0 : index
      %c0_31 = arith.constant 0 : index
      %47 = vector.load %arg9[%c0_30, %c0_31] : memref<128x1xf32, #tpu.memory_space<vmem>>, vector<128x1xf32>
      tpu.vector_store %arg9[%c0_30, %c0_31], %46 {strides = array<i32>} : memref<128x1xf32, #tpu.memory_space<vmem>>, vector<128x1xf32>,
      %cst_32 = arith.constant 0.000000e+00 : f32
      %48 = vector.broadcast %cst_32 : f32 to vector<128x1xf32>
      %c0_33 = arith.constant 0 : index
      %c0_34 = arith.constant 0 : index
      %49 = vector.load %arg10[%c0_33, %c0_34] : memref<128x1xf32, #tpu.memory_space<vmem>>, vector<128x1xf32>
      tpu.vector_store %arg10[%c0_33, %c0_34], %48 {strides = array<i32>} : memref<128x1xf32, #tpu.memory_space<vmem>>, vector<128x1xf32>,
    } else {
    }
    %c0 = arith.constant 0 : index
    %c0_1 = arith.constant 0 : index
    %3 = vector.load %arg2[%c0, %c0_1] : memref<128x1xf32, #tpu.memory_space<vmem>>, vector<128x1xf32>
    %c0_2 = arith.constant 0 : index
    %c0_3 = arith.constant 0 : index
    %4 = vector.load %arg3[%c0_2, %c0_3] : memref<1x128xf32, #tpu.memory_space<vmem>>, vector<1x128xf32>
    %5 = vector.broadcast %3 : vector<128x1xf32> to vector<128x128xf32>
    %6 = vector.broadcast %4 : vector<1x128xf32> to vector<128x128xf32>
    %7 = arith.addf %5, %6 : vector<128x128xf32>
    %cst = arith.constant 2.000000e-01 : f32
    %8 = vector.broadcast %cst : f32 to vector<128x128xf32>
    %9 = arith.mulf %8, %7 : vector<128x128xf32>
    %10 = arith.maximumf %7, %9 : vector<128x128xf32>
    %c0_4 = arith.constant 0 : index
    %c0_5 = arith.constant 0 : index
    %11 = vector.load %arg5[%c0_4, %c0_5] : memref<128x128xi8, #tpu.memory_space<vmem>>, vector<128x128xi8>
    %c0_i8 = arith.constant 0 : i8
    %12 = vector.broadcast %c0_i8 : i8 to vector<128x128xi8>
    %13 = arith.cmpi ne, %11, %12 : vector<128x128xi8>
    %cst_6 = arith.constant -1.000000e+30 : f32
    %14 = vector.broadcast %cst_6 : f32 to vector<128x128xf32>
    %15 = arith.select %13, %10, %14 : vector<128x128xi1>, vector<128x128xf32>
    %c0_7 = arith.constant 0 : index
    %c0_8 = arith.constant 0 : index
    %16 = vector.load %arg8[%c0_7, %c0_8] : memref<128x1xf32, #tpu.memory_space<vmem>>, vector<128x1xf32>
    %cst_9 = arith.constant dense<0xFF800000> : vector<128xf32>
    %17 = vector.multi_reduction <maximumf>, %15, %cst_9 [1] : vector<128x128xf32> to vector<128xf32>
    %18 = vector.shape_cast %17 : vector<128xf32> to vector<128x1xf32>
    %19 = arith.maximumf %16, %18 : vector<128x1xf32>
    %20 = arith.subf %16, %19 : vector<128x1xf32>
    %21 = math.exp %20 : vector<128x1xf32>
    %22 = vector.broadcast %19 : vector<128x1xf32> to vector<128x128xf32>
    %23 = arith.subf %15, %22 : vector<128x128xf32>
    %24 = math.exp %23 : vector<128x128xf32>
    %c0_10 = arith.constant 0 : index
    %c0_11 = arith.constant 0 : index
    %25 = vector.load %arg9[%c0_10, %c0_11] : memref<128x1xf32, #tpu.memory_space<vmem>>, vector<128x1xf32>
    %26 = arith.mulf %21, %25 : vector<128x1xf32>
    %cst_12 = arith.constant dense<0.000000e+00> : vector<128xf32>
    %27 = vector.multi_reduction <add>, %24, %cst_12 [1] : vector<128x128xf32> to vector<128xf32>
    %28 = vector.shape_cast %27 : vector<128xf32> to vector<128x1xf32>
    %29 = arith.addf %26, %28 : vector<128x1xf32>
    %c0_13 = arith.constant 0 : index
    %c0_14 = arith.constant 0 : index
    %30 = vector.load %arg9[%c0_13, %c0_14] : memref<128x1xf32, #tpu.memory_space<vmem>>, vector<128x1xf32>
    tpu.vector_store %arg9[%c0_13, %c0_14], %29 {strides = array<i32>} : memref<128x1xf32, #tpu.memory_space<vmem>>, vector<128x1xf32>,
    %c0_15 = arith.constant 0 : index
    %c0_16 = arith.constant 0 : index
    %31 = vector.load %arg10[%c0_15, %c0_16] : memref<128x1xf32, #tpu.memory_space<vmem>>, vector<128x1xf32>
    %32 = arith.mulf %21, %31 : vector<128x1xf32>
    %c0_17 = arith.constant 0 : index
    %c0_18 = arith.constant 0 : index
    %33 = vector.load %arg4[%c0_17, %c0_18] : memref<1x128xf32, #tpu.memory_space<vmem>>, vector<1x128xf32>
    %34 = vector.broadcast %33 : vector<1x128xf32> to vector<128x128xf32>
    %35 = arith.mulf %24, %34 : vector<128x128xf32>
    %cst_19 = arith.constant dense<0.000000e+00> : vector<128xf32>
    %36 = vector.multi_reduction <add>, %35, %cst_19 [1] : vector<128x128xf32> to vector<128xf32>
    %37 = vector.shape_cast %36 : vector<128xf32> to vector<128x1xf32>
    %38 = arith.addf %32, %37 : vector<128x1xf32>
    %c0_20 = arith.constant 0 : index
    %c0_21 = arith.constant 0 : index
    %39 = vector.load %arg10[%c0_20, %c0_21] : memref<128x1xf32, #tpu.memory_space<vmem>>, vector<128x1xf32>
    tpu.vector_store %arg10[%c0_20, %c0_21], %38 {strides = array<i32>} : memref<128x1xf32, #tpu.memory_space<vmem>>, vector<128x1xf32>,
    %c0_22 = arith.constant 0 : index
    %c0_23 = arith.constant 0 : index
    %40 = vector.load %arg8[%c0_22, %c0_23] : memref<128x1xf32, #tpu.memory_space<vmem>>, vector<128x1xf32>
    tpu.vector_store %arg8[%c0_22, %c0_23], %19 {strides = array<i32>} : memref<128x1xf32, #tpu.memory_space<vmem>>, vector<128x1xf32>,
    %c0_i32_24 = arith.constant 0 : i32
    %41 = arith.cmpi eq, %arg1, %c0_i32_24 : i32
    %42 = arith.extui %41 : i1 to i32
    %c0_i32_25 = arith.constant 0 : i32
    %43 = arith.cmpi ne, %42, %c0_i32_25 : i32
    scf.if %43 {
      %c0_26 = arith.constant 0 : index
      %c0_27 = arith.constant 0 : index
      %44 = vector.load %arg10[%c0_26, %c0_27] : memref<128x1xf32, #tpu.memory_space<vmem>>, vector<128x1xf32>
      %c0_28 = arith.constant 0 : index
      %c0_29 = arith.constant 0 : index
      %45 = vector.load %arg9[%c0_28, %c0_29] : memref<128x1xf32, #tpu.memory_space<vmem>>, vector<128x1xf32>
      %46 = tpu.reciprocal %45 : vector<128x1xf32> -> vector<128x1xf32>
      %47 = arith.mulf %44, %46 : vector<128x1xf32>
      %c0_30 = arith.constant 0 : index
      %c0_31 = arith.constant 0 : index
      %48 = memref.load %arg6[%c0_30, %c0_31] : memref<1x1xf32, #tpu.memory_space<smem>>
      %49 = vector.broadcast %48 : f32 to vector<128x1xf32>
      %50 = arith.addf %47, %49 : vector<128x1xf32>
      %c0_32 = arith.constant 0 : index
      %c0_33 = arith.constant 0 : index
      %51 = vector.load %arg7[%c0_32, %c0_33] : memref<128x1xf32, #tpu.memory_space<vmem>>, vector<128x1xf32>
      tpu.vector_store %arg7[%c0_32, %c0_33], %50 {strides = array<i32>} : memref<128x1xf32, #tpu.memory_space<vmem>>, vector<128x1xf32>,
    } else {
    }
    return
  }
  func.func @transform_0(%arg0: i32, %arg1: i32) -> (i32, i32) {
    %c0_i32 = arith.constant 0 : i32
    %c0_i32_0 = arith.constant 0 : i32
    return %arg0, %c0_i32 : i32, i32
  }
  func.func @transform_1(%arg0: i32, %arg1: i32) -> (i32, i32) {
    %c0_i32 = arith.constant 0 : i32
    %c0_i32_0 = arith.constant 0 : i32
    return %c0_i32, %arg1 : i32, i32
  }
  func.func @transform_2(%arg0: i32, %arg1: i32) -> (i32, i32) {
    %c0_i32 = arith.constant 0 : i32
    %c0_i32_0 = arith.constant 0 : i32
    return %c0_i32, %arg1 : i32, i32
  }
  func.func @transform_3(%arg0: i32, %arg1: i32) -> (i32, i32) {
    %c0_i32 = arith.constant 0 : i32
    return %arg0, %arg1 : i32, i32
  }
  func.func @transform_4(%arg0: i32, %arg1: i32) -> (i32, i32) {
    %c0_i32 = arith.constant 0 : i32
    %c0_i32_0 = arith.constant 0 : i32
    %c0_i32_1 = arith.constant 0 : i32
    return %c0_i32, %c0_i32_0 : i32, i32
  }
  func.func @transform_5(%arg0: i32, %arg1: i32) -> (i32, i32) {
    %c0_i32 = arith.constant 0 : i32
    %c0_i32_0 = arith.constant 0 : i32
    return %arg0, %c0_i32 : i32, i32
  }
}

</mosaic_0001>

<bundles_post_ra>
// kernel: tpu_custom_call.1
= control target key start
LH: loop header
LB: loop body
LE: loop exit
PB: predicated region body
PF: predicated region fallthrough
CT: control target
= control target key end

     0   :  { %v1047_v0 = vmov 0   ;;  %vm27_vm0 = vcmask 7168   ;;  %v1048_v17 = vmov -inf   ;;  %s1800_s0 = inlined_call_operand.vmem [shape: f32[128,1], index: 0, kind: input, shape index: {}]   ;;  %s1801_s3 = inlined_call_operand.vmem [shape: s8[128,128], index: 3, kind: input, shape index: {}]   ;;  %s1802_s1 = inlined_call_operand.vmem [shape: f32[1,128], index: 1, kind: input, shape index: {}]   ;;  %s1803_s2 = inlined_call_operand.vmem [shape: f32[1,128], index: 2, kind: input, shape index: {}]   ;;  %s1804_s4 = inlined_call_operand.<no memory space> [shape: f32[1,1], index: 4, kind: input, shape index: {}]   ;;  %s1805_s5 = inlined_call_operand.vmem [shape: f32[128,1], index: 5, kind: output, shape index: {}]  }
   0x1   :  { %950 = vset.pattern.permute.xlu1 %v1047_v0  ;;  %949 = vset.pattern.permute.xlu0 %v1047_v0  ;;  %v78_v1 = vld [vmem:[%s1800_s0 + $0x10] sm:$0xff]  ;;  %v76_v2 = vld [vmem:[%s1800_s0] sm:$0xff]  ;;  %v79_v3 = vld [vmem:[%s1800_s0 + $0x18] sm:$0xff]  ;;  %28 = vst.msk [vmem:[#allocation2] sm:$0xff] %vm27_vm0, %v1048_v17 }
   0x2   :  { %105 = vperm.xlu1 %950, %v78_v1   ;;  %95 = vperm.xlu0 %949, %v76_v2   ;;  %v77_v4 = vld [vmem:[%s1800_s0 + $0x8] sm:$0xff]  ;;  %v80_v6 = vld [vmem:[%s1800_s0 + $0x20] sm:$0xff]  ;;  %v83_v7 = vld [vmem:[%s1800_s0 + $0x38] sm:$0xff]  ;;  %29 = vst.msk [vmem:[#allocation2 + $0x8] sm:$0xff] %vm27_vm0, %v1048_v17 }
   0x3   :  { %v81_v5 = vld [vmem:[%s1800_s0 + $0x28] sm:$0xff]  ;;  %v82_v8 = vld [vmem:[%s1800_s0 + $0x30] sm:$0xff]  ;;  %v84_v10 = vld [vmem:[%s1800_s0 + $0x40] sm:$0xff]  ;;  %30 = vst.msk [vmem:[#allocation2 + $0x10] sm:$0xff] %vm27_vm0, %v1048_v17 }
   0x4   :  { %v85_v9 = vld [vmem:[%s1800_s0 + $0x48] sm:$0xff]  ;;  %v87_v11 = vld [vmem:[%s1800_s0 + $0x58] sm:$0xff]  ;;  %v86_v12 = vld [vmem:[%s1800_s0 + $0x50] sm:$0xff]  ;;  %31 = vst.msk [vmem:[#allocation2 + $0x18] sm:$0xff] %vm27_vm0, %v1048_v17 }
   0x5   :  { %v89_v13 = vld [vmem:[%s1800_s0 + $0x68] sm:$0xff]  ;;  %v88_v14 = vld [vmem:[%s1800_s0 + $0x60] sm:$0xff]  ;;  %v91_v15 = vld [vmem:[%s1800_s0 + $0x78] sm:$0xff]  ;;  %32 = vst.msk [vmem:[#allocation2 + $0x20] sm:$0xff] %vm27_vm0, %v1048_v17 }
   0x6   :  { %110 = vperm.xlu1 %950, %v79_v3   ;;  %100 = vperm.xlu0 %949, %v77_v4   ;;  %v90_v16 = vld [vmem:[%s1800_s0 + $0x70] sm:$0xff]  ;;  %33 = vst.msk [vmem:[#allocation2 + $0x28] sm:$0xff] %vm27_vm0, %v1048_v17  ;;  %34 = vst.msk [vmem:[#allocation2 + $0x30] sm:$0xff] %vm27_vm0, %v1048_v17  ;;  %v227_v18 = vld [vmem:[%s1801_s3] sm:$0xff] }
   0x7   :  { %35 = vst.msk [vmem:[#allocation2 + $0x38] sm:$0xff] %vm27_vm0, %v1048_v17  ;;  %36 = vst.msk [vmem:[#allocation2 + $0x40] sm:$0xff] %vm27_vm0, %v1048_v17  ;;  %vm231_vm1 = vnez %v227_v18  ;;  %v228_v20 = vld [vmem:[%s1801_s3 + $0x8] sm:$0xff]  ;;  %v229_v26 = vld [vmem:[%s1801_s3 + $0x10] sm:$0xff] }
   0x8   :  { %37 = vst.msk [vmem:[#allocation2 + $0x48] sm:$0xff] %vm27_vm0, %v1048_v17  ;;  %38 = vst.msk [vmem:[#allocation2 + $0x50] sm:$0xff] %vm27_vm0, %v1048_v17  ;;  %v235_v19 = vsel %vm231_vm1, 16843009, %v1047_v0  ;;  %vm232_vm2 = vnez %v228_v20  ;;  %vm233_vm3 = vnez %v229_v26  ;;  %v230_v56 = vld [vmem:[%s1801_s3 + $0x18] sm:$0xff] }
   0x9   :  { %39 = vst.msk [vmem:[#allocation2 + $0x58] sm:$0xff] %vm27_vm0, %v1048_v17  ;;  %40 = vst.msk [vmem:[#allocation2 + $0x60] sm:$0xff] %vm27_vm0, %v1048_v17  ;;  %v239_v21 = vunpack.c.0.s8 %v235_v19  ;;  %v241_v22 = vunpack.c.2.s8 %v235_v19  ;;  %v240_v23 = vunpack.c.1.s8 %v235_v19  ;;  %v242_v25 = vunpack.c.3.s8 %v235_v19  ;;  %v1172_v59 = vld [vmem:[%s1802_s1] ss:$0 sm:$0xff] }
   0xa   :  { %120 = vperm.xlu1 %950, %v81_v5   ;;  %115 = vperm.xlu0 %949, %v80_v6   ;;  %41 = vst.msk [vmem:[#allocation2 + $0x68] sm:$0xff] %vm27_vm0, %v1048_v17  ;;  %42 = vst.msk [vmem:[#allocation2 + $0x70] sm:$0xff] %vm27_vm0, %v1048_v17  ;;  %v236_v27 = vsel %vm232_vm2, 16843009, %v1047_v0  ;;  %v1158_v34 = vsel %vm233_vm3, 16843009, %v1047_v0  ;;  %vm234_vm12 = vnez %v230_v56 }
   0xb   :  { %43 = vst.msk [vmem:[#allocation2 + $0x78] sm:$0xff] %vm27_vm0, %v1048_v17  ;;  %v255_v24 = vpack.c.b16 %v239_v21, %v239_v21  ;;  %v259_v28 = vpack.c.b16 %v241_v22, %v241_v22  ;;  %v257_v29 = vpack.c.b16 %v240_v23, %v240_v23  ;;  %v261_v31 = vpack.c.b16 %v242_v25, %v242_v25 }
   0xc   :  { %v243_v32 = vunpack.c.0.s8 %v236_v27  ;;  %v244_v33 = vunpack.c.1.s8 %v236_v27  ;;  %v245_v37 = vunpack.c.2.s8 %v236_v27  ;;  %v246_v38 = vunpack.c.3.s8 %v236_v27 }
   0xd   :  { %v256_v30 = vpack.c.b8 %v255_v24, %v255_v24  ;;  %v260_v35 = vpack.c.b8 %v259_v28, %v259_v28  ;;  %v258_v36 = vpack.c.b8 %v257_v29, %v257_v29  ;;  %v262_v39 = vpack.c.b8 %v261_v31, %v261_v31  ;;  %v1408_v31 = vld [vmem:[#allocation2 + $0x20] sm:$0xff] }
   0xe   :  { %130 = vperm.xlu1 %950, %v83_v7   ;;  %125 = vperm.xlu0 %949, %v82_v8   ;;  %v263_v40 = vpack.c.b16 %v243_v32, %v243_v32  ;;  %v265_v41 = vpack.c.b16 %v244_v33, %v244_v33  ;;  %v247_v42 = vunpack.c.0.s8 %v1158_v34  ;;  %v267_v44 = vpack.c.b16 %v245_v37, %v245_v37 }
   0xf   :  { %vm287_vm4 = vnez %v256_v30  ;;  %vm289_vm5 = vnez %v260_v35  ;;  %vm288_vm6 = vnez %v258_v36  ;;  %vm290_vm7 = vnez %v262_v39 }
  0x10   :  { %v303_v43 = vsel %vm287_vm4, 16843009, %v1047_v0  ;;  %v264_v45 = vpack.c.b8 %v263_v40, %v263_v40  ;;  %v266_v46 = vpack.c.b8 %v265_v41, %v265_v41  ;;  %v269_v47 = vpack.c.b16 %v246_v38, %v246_v38 }
  0x11   :  { %v271_v48 = vpack.c.b16 %v247_v42, %v247_v42  ;;  %v319_v49 = vunpack.c.0.s8 %v303_v43  ;;  %v305_v50 = vsel %vm289_vm5, 16843009, %v1047_v0  ;;  %v304_v51 = vsel %vm288_vm6, 16843009, %v1047_v0 }
  0x12   :  { %140 = vperm.xlu1 %950, %v85_v9   ;;  %135 = vperm.xlu0 %949, %v84_v10   ;;  %v306_v52 = vsel %vm290_vm7, 16843009, %v1047_v0  ;;  %v268_v53 = vpack.c.b8 %v267_v44, %v267_v44  ;;  %vm291_vm8 = vnez %v264_v45  ;;  %vm292_vm9 = vnez %v266_v46 }
  0x13   :  { %v270_v54 = vpack.c.b8 %v269_v47, %v269_v47  ;;  %v248_v55 = vunpack.c.1.s8 %v1158_v34  ;;  %v321_v57 = vunpack.c.0.s8 %v305_v50  ;;  %v272_v58 = vpack.c.b8 %v271_v48, %v271_v48 }
  0x14   :  { %vm1174_vm10 = vcmp.ne.s32.totalorder %v319_v49, 0  ;;  %v320_v61 = vunpack.c.0.s8 %v304_v51  ;;  %v322_v62 = vunpack.c.0.s8 %v306_v52  ;;  %v307_v63 = vsel %vm291_vm8, 16843009, %v1047_v0 }
  0x15   :  { %v308_v1 = vsel %vm292_vm9, 16843009, %v1047_v0  ;;  %vm293_vm11 = vnez %v268_v53  ;;  %vm1180_vm13 = vnez %v270_v54  ;;  %v273_v5 = vpack.c.b16 %v248_v55, %v248_v55 }
  0x16   :  { %150 = vperm.xlu1 %950, %v87_v11   ;;  %145 = vperm.xlu0 %949, %v86_v12   ;;  %v249_v6 = vunpack.c.2.s8 %v1158_v34  ;;  %v250_v7 = vunpack.c.3.s8 %v1158_v34  ;;  %vm1188_vm14 = vcmp.ne.s32.totalorder %v321_v57, 0  ;;  %vm295_vm15 = vnez %v272_v58 }
  0x17   :  { %vm1192_vm1 = vcmp.ne.s32.totalorder %v320_v61, 0  ;;  %v323_v12 = vunpack.c.0.s8 %v307_v63  ;;  %vm1200_vm2 = vcmp.ne.s32.totalorder %v322_v62, 0  ;;  %v324_v18 = vunpack.c.0.s8 %v308_v1 }
  0x18   :  { %v310_v19 = vsel %vm1180_vm13, 16843009, %v1047_v0  ;;  %v311_v22 = vsel %vm295_vm15, 16843009, %v1047_v0  ;;  %v274_v23 = vpack.c.b8 %v273_v5, %v273_v5  ;;  %v275_v24 = vpack.c.b16 %v249_v6, %v249_v6 }
  0x19   :  { %v277_v25 = vpack.c.b16 %v250_v7, %v250_v7  ;;  %vm1211_vm3 = vcmp.ne.s32.totalorder %v323_v12, 0  ;;  %v326_v33 = vunpack.c.0.s8 %v310_v19  ;;  %vm1219_vm4 = vcmp.ne.s32.totalorder %v324_v18, 0 }
  0x1a   :  { %160 = vperm.xlu1 %950, %v89_v13   ;;  %155 = vperm.xlu0 %949, %v88_v14   ;;  %v309_v13 = vsel %vm293_vm11, 16843009, %v1047_v0  ;;  %v1198_v14 = vsel %vm234_vm12, 16843009, %v1047_v0  ;;  %v327_v38 = vunpack.c.0.s8 %v311_v22  ;;  %vm1224_vm5 = vnez %v274_v23 }
  0x1b   :  { %v251_v29 = vunpack.c.0.s8 %v1198_v14  ;;  %v325_v32 = vunpack.c.0.s8 %v309_v13  ;;  %v276_v42 = vpack.c.b8 %v275_v24, %v275_v24  ;;  %v278_v43 = vpack.c.b8 %v277_v25, %v277_v25 }
  0x1c   :  { %v252_v44 = vunpack.c.1.s8 %v1198_v14  ;;  %v253_v52 = vunpack.c.2.s8 %v1198_v14  ;;  %vm1244_vm7 = vcmp.ne.s32.totalorder %v326_v33, 0  ;;  %vm1250_vm8 = vcmp.ne.s32.totalorder %v327_v38, 0 }
  0x1d   :  { %v279_v48 = vpack.c.b16 %v251_v29, %v251_v29  ;;  %vm1235_vm6 = vcmp.ne.s32.totalorder %v325_v32, 0  ;;  %v312_v61 = vsel %vm1224_vm5, 16843009, %v1047_v0  ;;  %vm1257_vm9 = vnez %v276_v42 }
  0x1e   :  { %170 = vperm.xlu1 %950, %v91_v15   ;;  %165 = vperm.xlu0 %949, %v90_v16   ;;  %v281_v1 = vpack.c.b16 %v252_v44, %v252_v44  ;;  %v313_v17 = vsel %vm1257_vm9, 16843009, %v1047_v0 }
  0x1f   :  { %v280_v5 = vpack.c.b8 %v279_v48, %v279_v48  ;;  %v329_v32 = vunpack.c.0.s8 %v313_v17 }
  0x20   :  { %v282_v18 = vpack.c.b8 %v281_v1, %v281_v1 }
  0x21   :  { %vm299_vm11 = vnez %v280_v5  ;;  %vm345_vm15 = vcmp.ne.s32.totalorder %v329_v32, 0  ;;  %v1410_v32 = vld [vmem:[#allocation2 + $0x18] sm:$0xff] }
  0x22   :  { %vm300_vm13 = vnez %v282_v18 }
  0x23   :  { %v1314_v48 = vsel %vm300_vm13, 16843009, %v1047_v0 }
  0x24   :  { %v332_v1 = vunpack.c.0.s8 %v1314_v48 }
  0x7d   :  { %v106_v2 = vpop.permute.xlu1 %105  ;;  %v96_v3 = vpop.permute.xlu0 %95 }
  0x7e   :  { %v181_v8 = vadd.f32 %v1172_v59, %v106_v2  ;;  %v179_v9 = vadd.f32 %v1172_v59, %v96_v3 }
  0x80   :  { %v197_v15 = vmul.f32 0.2, %v181_v8  ;;  %v195_v16 = vmul.f32 0.2, %v179_v9 }
  0x81   :  { %v111_v20 = vpop.permute.xlu1 %110  ;;  %v101_v21 = vpop.permute.xlu0 %100 }
  0x82   :  { %v182_v26 = vadd.f32 %v1172_v59, %v111_v20  ;;  %v180_v27 = vadd.f32 %v1172_v59, %v101_v21  ;;  %v211_v28 = vmax.f32 %v179_v9, %v195_v16  ;;  %v213_v30 = vmax.f32 %v181_v8, %v197_v15 }
  0x83   :  { %v283_v8 = vpack.c.b16 %v253_v52, %v253_v52  ;;  %v254_v9 = vunpack.c.3.s8 %v1198_v14  ;;  %v328_v16 = vunpack.c.0.s8 %v312_v61 }
  0x84   :  { %v198_v34 = vmul.f32 0.2, %v182_v26  ;;  %v196_v35 = vmul.f32 0.2, %v180_v27  ;;  %v1217_v36 = vsel %vm1174_vm10, %v211_v28, -1e+30  ;;  %vm1261_vm10 = vnez %v278_v43 }
  0x85   :  { %v121_v39 = vpop.permute.xlu1 %120  ;;  %383 = vmax.xlane.f32.xlu0 %v1217_v36  ;;  %v116_v40 = vpop.permute.xlu0 %115  ;;  %v1233_v49 = vsel %vm1188_vm14, %v213_v30, -1e+30  ;;  %v314_v14 = vsel %vm1261_vm10, 16843009, %v1047_v0  ;;  %v284_v24 = vpack.c.b8 %v283_v8, %v283_v8  ;;  %v285_v25 = vpack.c.b16 %v254_v9, %v254_v9 }
  0x86   :  { %v184_v45 = vadd.f32 %v1172_v59, %v121_v39  ;;  %v183_v46 = vadd.f32 %v1172_v59, %v116_v40  ;;  %v212_v47 = vmax.f32 %v180_v27, %v196_v35  ;;  %v214_v50 = vmax.f32 %v182_v26, %v198_v34 }
  0x87   :  { %vm1296_vm12 = vcmp.ne.s32.totalorder %v328_v16, 0  ;;  %v330_v33 = vunpack.c.0.s8 %v314_v14  ;;  %v315_v34 = vsel %vm299_vm11, 16843009, %v1047_v0  ;;  %vm301_vm14 = vnez %v284_v24  ;;  %v1395_v24 = vld [vmem:[#allocation2 + $0x10] sm:$0xff] }
  0x88   :  { %v200_v53 = vmul.f32 0.2, %v184_v45  ;;  %v199_v54 = vmul.f32 0.2, %v183_v46  ;;  %v1242_v55 = vsel %vm1192_vm1, %v212_v47, -1e+30  ;;  %v286_v41 = vpack.c.b8 %v285_v25, %v285_v25 }
  0x89   :  { %v131_v57 = vpop.permute.xlu1 %130  ;;  %387 = vmax.xlane.f32.xlu0 %v1233_v49  ;;  %385 = vmax.xlane.f32.xlu1 %v1242_v55  ;;  %v126_v58 = vpop.permute.xlu0 %125  ;;  %v1269_v6 = vsel %vm1200_vm2, %v214_v50, -1e+30  ;;  %v331_v47 = vunpack.c.0.s8 %v315_v34  ;;  %vm1325_vm1 = vcmp.ne.s32.totalorder %v330_v33, 0 }
  0x8a   :  { %v186_v2 = vadd.f32 %v1172_v59, %v131_v57  ;;  %v185_v3 = vadd.f32 %v1172_v59, %v126_v58  ;;  %v215_v4 = vmax.f32 %v183_v46, %v199_v54  ;;  %v216_v7 = vmax.f32 %v184_v45, %v200_v53 }
  0x8b   :  { %v317_v53 = vsel %vm301_vm14, 16843009, %v1047_v0  ;;  %vm302_vm2 = vnez %v286_v41  ;;  %v1428_v41 = vld [vmem:[#allocation2 + $0x30] sm:$0xff] }
  0x8c   :  { %v202_v10 = vmul.f32 0.2, %v186_v2  ;;  %v201_v11 = vmul.f32 0.2, %v185_v3  ;;  %v1274_v12 = vsel %vm1211_vm3, %v215_v4, -1e+30 }
  0x8d   :  { %v141_v13 = vpop.permute.xlu1 %140  ;;  %389 = vmax.xlane.f32.xlu0 %v1269_v6  ;;  %391 = vmax.xlane.f32.xlu1 %v1274_v12  ;;  %v136_v15 = vpop.permute.xlu0 %135  ;;  %v1288_v22 = vsel %vm1219_vm4, %v216_v7, -1e+30  ;;  %vm347_vm3 = vcmp.ne.s32.totalorder %v331_v47, 0  ;;  %v318_v7 = vsel %vm302_vm2, 16843009, %v1047_v0  ;;  %vm348_vm4 = vcmp.ne.s32.totalorder %v332_v1, 0 }
  0x8e   :  { %v188_v19 = vadd.f32 %v1172_v59, %v141_v13  ;;  %v187_v20 = vadd.f32 %v1172_v59, %v136_v15  ;;  %v217_v21 = vmax.f32 %v185_v3, %v201_v11  ;;  %v218_v23 = vmax.f32 %v186_v2, %v202_v10  ;;  %v1470_v1 = vld [vmem:[#allocation2 + $0x48] sm:$0xff] }
  0x8f   :  { %v333_v2 = vunpack.c.0.s8 %v317_v53  ;;  %v1049_v15 = vmov 0.0   ;;  %v334_v0 = vunpack.c.0.s8 %v318_v7 }
  0x90   :  { %v204_v26 = vmul.f32 0.2, %v188_v19  ;;  %v203_v27 = vmul.f32 0.2, %v187_v20  ;;  %v1292_v28 = vsel %vm1235_vm6, %v217_v21, -1e+30 }
  0x91   :  { %v151_v29 = vpop.permute.xlu1 %150  ;;  %393 = vmax.xlane.f32.xlu0 %v1288_v22  ;;  %395 = vmax.xlane.f32.xlu1 %v1292_v28  ;;  %v146_v30 = vpop.permute.xlu0 %145  ;;  %v1305_v39 = vsel %vm1244_vm7, %v218_v23, -1e+30  ;;  %44 = vst.msk [vmem:[#allocation3] sm:$0xff] %vm27_vm0, %v1049_v15  ;;  %45 = vst.msk [vmem:[#allocation3 + $0x8] sm:$0xff] %vm27_vm0, %v1049_v15  ;;  %vm349_vm5 = vcmp.ne.s32.totalorder %v333_v2, 0  ;;  %vm350_vm6 = vcmp.ne.s32.totalorder %v334_v0, 0 }
  0x92   :  { %v190_v35 = vadd.f32 %v1172_v59, %v151_v29  ;;  %v189_v37 = vadd.f32 %v1172_v59, %v146_v30  ;;  %v219_v38 = vmax.f32 %v187_v20, %v203_v27  ;;  %v220_v40 = vmax.f32 %v188_v19, %v204_v26  ;;  %46 = vst.msk [vmem:[#allocation3 + $0x10] sm:$0xff] %vm27_vm0, %v1049_v15  ;;  %v1388_v19 = vld [vmem:[#allocation2] sm:$0xff]  ;;  %v1393_v23 = vld [vmem:[#allocation2 + $0x8] sm:$0xff] }
  0x93   :  { %47 = vst.msk [vmem:[#allocation3 + $0x18] sm:$0xff] %vm27_vm0, %v1049_v15  ;;  %48 = vst.msk [vmem:[#allocation3 + $0x20] sm:$0xff] %vm27_vm0, %v1049_v15 }
  0x94   :  { %v206_v42 = vmul.f32 0.2, %v190_v35  ;;  %v205_v43 = vmul.f32 0.2, %v189_v37  ;;  %v1309_v44 = vsel %vm1250_vm8, %v219_v38, -1e+30 }
  0x95   :  { %v161_v45 = vpop.permute.xlu1 %160  ;;  %397 = vmax.xlane.f32.xlu0 %v1305_v39  ;;  %399 = vmax.xlane.f32.xlu1 %v1309_v44  ;;  %v156_v46 = vpop.permute.xlu0 %155  ;;  %v1323_v54 = vsel %vm1296_vm12, %v220_v40, -1e+30  ;;  %49 = vst.msk [vmem:[#allocation3 + $0x28] sm:$0xff] %vm27_vm0, %v1049_v15  ;;  %50 = vst.msk [vmem:[#allocation3 + $0x30] sm:$0xff] %vm27_vm0, %v1049_v15 }
  0x96   :  { %v1317_v50 = vadd.f32 %v1172_v59, %v161_v45  ;;  %v191_v51 = vadd.f32 %v1172_v59, %v156_v46  ;;  %v221_v52 = vmax.f32 %v189_v37, %v205_v43  ;;  %v222_v56 = vmax.f32 %v190_v35, %v206_v42  ;;  %51 = vst.msk [vmem:[#allocation3 + $0x38] sm:$0xff] %vm27_vm0, %v1049_v15  ;;  %v1430_v42 = vld [vmem:[#allocation2 + $0x28] sm:$0xff] }
  0x97   :  { %52 = vst.msk [vmem:[#allocation3 + $0x40] sm:$0xff] %vm27_vm0, %v1049_v15  ;;  %53 = vst.msk [vmem:[#allocation3 + $0x48] sm:$0xff] %vm27_vm0, %v1049_v15 }
  0x98   :  { %v208_v58 = vmul.f32 0.2, %v1317_v50  ;;  %v207_v60 = vmul.f32 0.2, %v191_v51  ;;  %v1330_v61 = vsel %vm345_vm15, %v221_v52, -1e+30 }
  0x99   :  { %v171_v62 = vpop.permute.xlu1 %170  ;;  %401 = vmax.xlane.f32.xlu0 %v1323_v54  ;;  %403 = vmax.xlane.f32.xlu1 %v1330_v61  ;;  %v166_v63 = vpop.permute.xlu0 %165  ;;  %v1340_v8 = vsel %vm1325_vm1, %v222_v56, -1e+30  ;;  %54 = vst.msk [vmem:[#allocation3 + $0x50] sm:$0xff] %vm27_vm0, %v1049_v15  ;;  %55 = vst.msk [vmem:[#allocation3 + $0x58] sm:$0xff] %vm27_vm0, %v1049_v15  ;;  %v1450_v52 = vld [vmem:[#allocation2 + $0x38] sm:$0xff] }
  0x9a   :  { %v194_v3 = vadd.f32 %v1172_v59, %v171_v62  ;;  %v193_v4 = vadd.f32 %v1172_v59, %v166_v63  ;;  %v223_v5 = vmax.f32 %v191_v51, %v207_v60  ;;  %v224_v13 = vmax.f32 %v1317_v50, %v208_v58  ;;  %56 = vst.msk [vmem:[#allocation3 + $0x60] sm:$0xff] %vm27_vm0, %v1049_v15  ;;  %v1448_v51 = vld [vmem:[#allocation2 + $0x40] sm:$0xff]  ;;  %v1468_v63 = vld [vmem:[#allocation2 + $0x50] sm:$0xff] }
  0x9b   :  { %57 = vst.msk [vmem:[#allocation3 + $0x68] sm:$0xff] %vm27_vm0, %v1049_v15  ;;  %58 = vst.msk [vmem:[#allocation3 + $0x70] sm:$0xff] %vm27_vm0, %v1049_v15 }
  0x9c   :  { %v210_v9 = vmul.f32 0.2, %v194_v3  ;;  %v209_v10 = vmul.f32 0.2, %v193_v4  ;;  %v1342_v11 = vsel %vm347_vm3, %v223_v5, -1e+30 }
  0x9d   :  { %59 = vst.msk [vmem:[#allocation3 + $0x78] sm:$0xff] %vm27_vm0, %v1049_v15  ;;  %60 = vst.msk [vmem:[#allocation4] sm:$0xff] %vm27_vm0, %v1049_v15  ;;  %405 = vmax.xlane.f32.xlu0 %v1340_v8  ;;  %407 = vmax.xlane.f32.xlu1 %v1342_v11  ;;  %v1379_v16 = vsel %vm348_vm4, %v224_v13, -1e+30  ;;  %v1490_v13 = vld [vmem:[#allocation2 + $0x58] sm:$0xff] }
  0x9e   :  { %61 = vst.msk [vmem:[#allocation4 + $0x8] sm:$0xff] %vm27_vm0, %v1049_v15  ;;  %62 = vst.msk [vmem:[#allocation4 + $0x10] sm:$0xff] %vm27_vm0, %v1049_v15  ;;  %v225_v59 = vmax.f32 %v193_v4, %v209_v10  ;;  %v226_v14 = vmax.f32 %v194_v3, %v210_v9  ;;  %v1488_v10 = vld [vmem:[#allocation2 + $0x60] sm:$0xff] }
  0x9f   :  { %63 = vst.msk [vmem:[#allocation4 + $0x18] sm:$0xff] %vm27_vm0, %v1049_v15  ;;  %64 = vst.msk [vmem:[#allocation4 + $0x20] sm:$0xff] %vm27_vm0, %v1049_v15 }
  0xa0   :  { %65 = vst.msk [vmem:[#allocation4 + $0x28] sm:$0xff] %vm27_vm0, %v1049_v15  ;;  %66 = vst.msk [vmem:[#allocation4 + $0x30] sm:$0xff] %vm27_vm0, %v1049_v15  ;;  %v1381_v17 = vsel %vm349_vm5, %v225_v59, -1e+30  ;;  %v1385_v18 = vsel %vm350_vm6, %v226_v14, -1e+30 }
  0xa1   :  { %67 = vst.msk [vmem:[#allocation4 + $0x38] sm:$0xff] %vm27_vm0, %v1049_v15  ;;  %68 = vst.msk [vmem:[#allocation4 + $0x40] sm:$0xff] %vm27_vm0, %v1049_v15  ;;  %409 = vmax.xlane.f32.xlu0 %v1379_v16  ;;  %411 = vmax.xlane.f32.xlu1 %v1381_v17 }
  0xa2   :  { %69 = vst.msk [vmem:[#allocation4 + $0x48] sm:$0xff] %vm27_vm0, %v1049_v15  ;;  %70 = vst.msk [vmem:[#allocation4 + $0x50] sm:$0xff] %vm27_vm0, %v1049_v15 }
  0xa3   :  { %71 = vst.msk [vmem:[#allocation4 + $0x58] sm:$0xff] %vm27_vm0, %v1049_v15  ;;  %72 = vst.msk [vmem:[#allocation4 + $0x60] sm:$0xff] %vm27_vm0, %v1049_v15 }
  0xa4   :  { %73 = vst.msk [vmem:[#allocation4 + $0x68] sm:$0xff] %vm27_vm0, %v1049_v15  ;;  %74 = vst.msk [vmem:[#allocation4 + $0x70] sm:$0xff] %vm27_vm0, %v1049_v15 }
  0xa5   :  { %75 = vst.msk [vmem:[#allocation4 + $0x78] sm:$0xff] %vm27_vm0, %v1049_v15  ;;  %413 = vmax.xlane.f32.xlu0 %v1385_v18 }
 0x10e   :  { %v384_v20 = vpop.xlane.xlu0 %383 }
 0x10f   :  { %v1391_v21 = vmax.f32 %v1388_v19, %v384_v20 }
 0x111   :  { %v431_v25 = vsub.f32 %v1388_v19, %v1391_v21  ;;  %823 = vst.msk [vmem:[#allocation2] sm:$0xff] %vm27_vm0, %v1391_v21  ;;  %481 = vperm.xlu1 %950, %v1391_v21  }
 0x112   :  { %v386_v26 = vpop.xlane.xlu1 %385  ;;  %v388_v27 = vpop.xlane.xlu0 %387 }
 0x113   :  { %v1403_v29 = vmax.f32 %v1393_v23, %v386_v26  ;;  %v1406_v30 = vmax.f32 %v1395_v24, %v388_v27  ;;  %v1508_v27 = vld [vmem:[#allocation2 + $0x70] sm:$0xff] }
 0x115   :  { %824 = vst.msk [vmem:[#allocation2 + $0x8] sm:$0xff] %vm27_vm0, %v1403_v29  ;;  %v433_v34 = vsub.f32 %v1395_v24, %v1406_v30  ;;  %825 = vst.msk [vmem:[#allocation2 + $0x10] sm:$0xff] %vm27_vm0, %v1406_v30  ;;  %486 = vperm.xlu0 %949, %v1403_v29   ;;  %491 = vperm.xlu1 %950, %v1406_v30  }
 0x116   :  { %v392_v35 = vpop.xlane.xlu1 %391  ;;  %v390_v37 = vpop.xlane.xlu0 %389 }
 0x117   :  { %v1423_v38 = vmax.f32 %v1408_v31, %v392_v35  ;;  %v1426_v40 = vmax.f32 %v1410_v32, %v390_v37  ;;  %v1510_v35 = vld [vmem:[#allocation2 + $0x68] sm:$0xff] }
 0x119   :  { %827 = vst.msk [vmem:[#allocation2 + $0x20] sm:$0xff] %vm27_vm0, %v1423_v38  ;;  %826 = vst.msk [vmem:[#allocation2 + $0x18] sm:$0xff] %vm27_vm0, %v1426_v40  ;;  %501 = vperm.xlu0 %949, %v1423_v38   ;;  %496 = vperm.xlu1 %950, %v1426_v40  }
 0x11a   :  { %v396_v46 = vpop.xlane.xlu1 %395  ;;  %v394_v47 = vpop.xlane.xlu0 %393 }
 0x11b   :  { %v1443_v48 = vmax.f32 %v1428_v41, %v396_v46  ;;  %v1446_v50 = vmax.f32 %v1430_v42, %v394_v47 }
 0x11d   :  { %829 = vst.msk [vmem:[#allocation2 + $0x30] sm:$0xff] %vm27_vm0, %v1443_v48  ;;  %828 = vst.msk [vmem:[#allocation2 + $0x28] sm:$0xff] %vm27_vm0, %v1446_v50  ;;  %511 = vperm.xlu0 %949, %v1443_v48   ;;  %506 = vperm.xlu1 %950, %v1446_v50   ;;  %v1839_v21 = vsub.f32 %v1430_v42, %v1446_v50 }
 0x11e   :  { %v400_v57 = vpop.xlane.xlu1 %399  ;;  %v398_v58 = vpop.xlane.xlu0 %397 }
 0x11f   :  { %v1463_v60 = vmax.f32 %v1448_v51, %v400_v57  ;;  %v1466_v62 = vmax.f32 %v1450_v52, %v398_v58  ;;  %v457_v24 = vmul.f32 1.442695, %v1839_v21 }
 0x121   :  { %831 = vst.msk [vmem:[#allocation2 + $0x40] sm:$0xff] %vm27_vm0, %v1463_v60  ;;  %830 = vst.msk [vmem:[#allocation2 + $0x38] sm:$0xff] %vm27_vm0, %v1466_v62  ;;  %521 = vperm.xlu0 %949, %v1463_v60   ;;  %516 = vperm.xlu1 %950, %v1466_v62  }
 0x122   :  { %v404_v4 = vpop.xlane.xlu1 %403  ;;  %v402_v5 = vpop.xlane.xlu0 %401 }
 0x123   :  { %v1483_v7 = vmax.f32 %v1468_v63, %v404_v4  ;;  %v1486_v9 = vmax.f32 %v1470_v1, %v402_v5  ;;  %v1528_v5 = vld [vmem:[#allocation2 + $0x78] sm:$0xff] }
 0x125   :  { %833 = vst.msk [vmem:[#allocation2 + $0x50] sm:$0xff] %vm27_vm0, %v1483_v7  ;;  %832 = vst.msk [vmem:[#allocation2 + $0x48] sm:$0xff] %vm27_vm0, %v1486_v9  ;;  %531 = vperm.xlu0 %949, %v1483_v7   ;;  %526 = vperm.xlu1 %950, %v1486_v9   ;;  %v1844_v50 = vsub.f32 %v1468_v63, %v1483_v7 }
 0x126   :  { %v408_v59 = vpop.xlane.xlu1 %407  ;;  %v406_v14 = vpop.xlane.xlu0 %405 }
 0x127   :  { %v1503_v20 = vmax.f32 %v1488_v10, %v408_v59  ;;  %v1506_v26 = vmax.f32 %v1490_v13, %v406_v14 }
 0x129   :  { %835 = vst.msk [vmem:[#allocation2 + $0x60] sm:$0xff] %vm27_vm0, %v1503_v20  ;;  %834 = vst.msk [vmem:[#allocation2 + $0x58] sm:$0xff] %vm27_vm0, %v1506_v26  ;;  %541 = vperm.xlu0 %949, %v1503_v20   ;;  %536 = vperm.xlu1 %950, %v1506_v26   ;;  %v1846_v63 = vsub.f32 %v1488_v10, %v1503_v20 }
 0x12a   :  { %v412_v47 = vpop.xlane.xlu1 %411  ;;  %v410_v57 = vpop.xlane.xlu0 %409 }
 0x12b   :  { %v1523_v58 = vmax.f32 %v1508_v27, %v412_v47  ;;  %v1526_v4 = vmax.f32 %v1510_v35, %v410_v57  ;;  %v471_v7 = vmul.f32 1.442695, %v1846_v63  ;;  %v620_v63 = vld [vmem:[#allocation3 + $0x68] sm:$0xff] }
 0x12d   :  { %837 = vst.msk [vmem:[#allocation2 + $0x70] sm:$0xff] %vm27_vm0, %v1523_v58  ;;  %836 = vst.msk [vmem:[#allocation2 + $0x68] sm:$0xff] %vm27_vm0, %v1526_v4  ;;  %551 = vperm.xlu0 %949, %v1523_v58   ;;  %546 = vperm.xlu1 %950, %v1526_v4  }
 0x12e   :  { %v414_v47 = vpop.xlane.xlu0 %413 }
 0x12f   :  { %v1541_v57 = vmax.f32 %v1528_v5, %v414_v47 }
 0x131   :  { %838 = vst.msk [vmem:[#allocation2 + $0x78] sm:$0xff] %vm27_vm0, %v1541_v57  ;;  %556 = vperm.xlu1 %950, %v1541_v57  }
 0x18c   :  { %v482_v14 = vpop.permute.xlu1 %481 }
 0x18d   :  { %v559_v37 = vsub.f32 %v1217_v36, %v482_v14 }
 0x18f   :  { %v575_v46 = vmul.f32 1.442695, %v559_v37 }
 0x190   :  { %v492_v15 = vpop.permute.xlu1 %491  ;;  %v487_v0 = vpop.permute.xlu0 %486 }
 0x191   :  { %951 = vpow2.f32 %v575_v46  ;;  %v561_v2 = vsub.f32 %v1233_v49, %v492_v15  ;;  %v560_v47 = vsub.f32 %v1242_v55, %v487_v0 }
 0x193   :  { %v579_v3 = vmul.f32 1.442695, %v561_v2  ;;  %v577_v53 = vmul.f32 1.442695, %v560_v47 }
 0x194   :  { %v497_v56 = vpop.permute.xlu1 %496  ;;  %v502_v59 = vpop.permute.xlu0 %501 }
 0x195   :  { %953 = vpow2.f32 %v579_v3  ;;  %v562_v43 = vsub.f32 %v1269_v6, %v497_v56  ;;  %v563_v45 = vsub.f32 %v1274_v12, %v502_v59 }
 0x196   :  { %955 = vpow2.f32 %v577_v53 }
 0x197   :  { %v581_v33 = vmul.f32 1.442695, %v562_v43  ;;  %v583_v36 = vmul.f32 1.442695, %v563_v45 }
 0x198   :  { %v507_v37 = vpop.permute.xlu1 %506  ;;  %v512_v14 = vpop.permute.xlu0 %511 }
 0x199   :  { %957 = vpow2.f32 %v581_v33  ;;  %v564_v46 = vsub.f32 %v1288_v22, %v507_v37  ;;  %v565_v49 = vsub.f32 %v1292_v28, %v512_v14 }
 0x19a   :  { %959 = vpow2.f32 %v583_v36 }
 0x19b   :  { %v585_v55 = vmul.f32 1.442695, %v564_v46  ;;  %v587_v2 = vmul.f32 1.442695, %v565_v49 }
 0x19c   :  { %v517_v15 = vpop.permute.xlu1 %516  ;;  %v522_v0 = vpop.permute.xlu0 %521 }
 0x19d   :  { %961 = vpow2.f32 %v585_v55  ;;  %v566_v6 = vsub.f32 %v1305_v39, %v517_v15  ;;  %v567_v12 = vsub.f32 %v1309_v44, %v522_v0 }
 0x19e   :  { %v1557_v53 = vpop.eup %951  ;;  %963 = vpow2.f32 %v587_v2 }
 0x19f   :  { %v589_v43 = vmul.f32 1.442695, %v566_v6  ;;  %v591_v45 = vmul.f32 1.442695, %v567_v12  ;;  %639 = vadd.xlane.f32.xlu0 %v1557_v53 }
 0x1a0   :  { %v527_v22 = vpop.permute.xlu1 %526  ;;  %v532_v33 = vpop.permute.xlu0 %531 }
 0x1a1   :  { %965 = vpow2.f32 %v589_v43  ;;  %v568_v28 = vsub.f32 %v1323_v54, %v527_v22  ;;  %v569_v56 = vsub.f32 %v1330_v61, %v532_v33 }
 0x1a2   :  { %v954_v3 = vpop.eup %953  ;;  %967 = vpow2.f32 %v591_v45 }
 0x1a3   :  { %v956_v59 = vpop.eup %955  ;;  %v593_v39 = vmul.f32 1.442695, %v568_v28  ;;  %v595_v47 = vmul.f32 1.442695, %v569_v56  ;;  %643 = vadd.xlane.f32.xlu0 %v954_v3 }
 0x1a4   :  { %641 = vadd.xlane.f32.xlu1 %v956_v59  ;;  %v537_v44 = vpop.permute.xlu1 %536  ;;  %v542_v36 = vpop.permute.xlu0 %541 }
 0x1a5   :  { %969 = vpow2.f32 %v593_v39  ;;  %v570_v37 = vsub.f32 %v1340_v8, %v537_v44  ;;  %v571_v14 = vsub.f32 %v1342_v11, %v542_v36 }
 0x1a6   :  { %v958_v46 = vpop.eup %957  ;;  %971 = vpow2.f32 %v595_v47 }
 0x1a7   :  { %v960_v49 = vpop.eup %959  ;;  %v597_v54 = vmul.f32 1.442695, %v570_v37  ;;  %v599_v55 = vmul.f32 1.442695, %v571_v14  ;;  %645 = vadd.xlane.f32.xlu0 %v958_v46 }
 0x1a8   :  { %647 = vadd.xlane.f32.xlu1 %v960_v49  ;;  %v547_v61 = vpop.permute.xlu1 %546  ;;  %v552_v2 = vpop.permute.xlu0 %551 }
 0x1a9   :  { %973 = vpow2.f32 %v597_v54  ;;  %v572_v15 = vsub.f32 %v1379_v16, %v547_v61  ;;  %v573_v0 = vsub.f32 %v1381_v17, %v552_v2 }
 0x1aa   :  { %v962_v6 = vpop.eup %961  ;;  %975 = vpow2.f32 %v599_v55 }
 0x1ab   :  { %v964_v12 = vpop.eup %963  ;;  %v601_v8 = vmul.f32 1.442695, %v572_v15  ;;  %v603_v43 = vmul.f32 1.442695, %v573_v0  ;;  %649 = vadd.xlane.f32.xlu0 %v962_v6 }
 0x1ac   :  { %651 = vadd.xlane.f32.xlu1 %v964_v12  ;;  %v557_v11 = vpop.permute.xlu1 %556 }
 0x1ad   :  { %977 = vpow2.f32 %v601_v8  ;;  %v574_v45 = vsub.f32 %v1385_v18, %v557_v11  ;;  %v945_v18 = vld [vmem:[%s1803_s2] ss:$0 sm:$0xff]  ;;  %v451_v11 = vmul.f32 1.442695, %v433_v34 }
 0x1ae   :  { %v966_v22 = vpop.eup %965  ;;  %979 = vpow2.f32 %v603_v43  ;;  %v743_v37 = vmul.f32 %v1557_v53, %v945_v18  ;;  %v744_v14 = vmul.f32 %v956_v59, %v945_v18  ;;  %v745_v54 = vmul.f32 %v954_v3, %v945_v18 }
 0x1af   :  { %v968_v33 = vpop.eup %967  ;;  %v605_v28 = vmul.f32 1.442695, %v574_v45  ;;  %653 = vadd.xlane.f32.xlu0 %v966_v22  ;;  %v746_v55 = vmul.f32 %v958_v46, %v945_v18  ;;  %v747_v61 = vmul.f32 %v960_v49, %v945_v18  ;;  %v748_v2 = vmul.f32 %v962_v6, %v945_v18 }
 0x1b0   :  { %655 = vadd.xlane.f32.xlu1 %v968_v33  ;;  %v749_v15 = vmul.f32 %v964_v12, %v945_v18  ;;  %v750_v0 = vmul.f32 %v966_v22, %v945_v18  ;;  %v751_v8 = vmul.f32 %v968_v33, %v945_v18  ;;  %v447_v12 = vmul.f32 1.442695, %v431_v25 }
 0x1b1   :  { %981 = vpow2.f32 %v605_v28  ;;  %v1836_v45 = vsub.f32 %v1393_v23, %v1403_v29  ;;  %v1837_v33 = vsub.f32 %v1410_v32, %v1426_v40  ;;  %v1840_v23 = vsub.f32 %v1428_v41, %v1443_v48 }
 0x1b2   :  { %v970_v16 = vpop.eup %969  ;;  %983 = vpow2.f32 %v447_v12  ;;  %v1841_v29 = vsub.f32 %v1450_v52, %v1466_v62  ;;  %v1843_v40 = vsub.f32 %v1470_v1, %v1486_v9  ;;  %v467_v52 = vmul.f32 1.442695, %v1844_v50 }
 0x1b3   :  { %v972_v17 = vpop.eup %971  ;;  %657 = vadd.xlane.f32.xlu0 %v970_v16  ;;  %v752_v43 = vmul.f32 %v970_v16, %v945_v18  ;;  %v449_v22 = vmul.f32 1.442695, %v1836_v45  ;;  %985 = vpow2.f32 %v451_v11  ;;  %v453_v28 = vmul.f32 1.442695, %v1837_v33  ;;  %v614_v11 = vld [vmem:[#allocation3 + $0x38] sm:$0xff] }
 0x1b4   :  { %659 = vadd.xlane.f32.xlu1 %v972_v17  ;;  %v753_v53 = vmul.f32 %v972_v17, %v945_v18  ;;  %v1838_v16 = vsub.f32 %v1408_v31, %v1423_v38  ;;  %v459_v25 = vmul.f32 1.442695, %v1840_v23  ;;  %v461_v30 = vmul.f32 1.442695, %v1841_v29  ;;  %v607_v38 = vld [vmem:[#allocation3] sm:$0xff]  ;;  %v609_v17 = vld [vmem:[#allocation3 + $0x10] sm:$0xff] }
 0x1b5   :  { %987 = vpow2.f32 %v449_v22  ;;  %v1842_v31 = vsub.f32 %v1448_v51, %v1463_v60  ;;  %v465_v42 = vmul.f32 1.442695, %v1843_v40  ;;  %v608_v60 = vld [vmem:[#allocation3 + $0x8] sm:$0xff]  ;;  %v1845_v1 = vsub.f32 %v1490_v13, %v1506_v26  ;;  %v611_v26 = vld [vmem:[#allocation3 + $0x20] sm:$0xff] }
 0x1b6   :  { %v974_v56 = vpop.eup %973  ;;  %v455_v19 = vmul.f32 1.442695, %v1838_v16  ;;  %989 = vpow2.f32 %v453_v28  ;;  %v615_v28 = vld [vmem:[#allocation3 + $0x40] sm:$0xff] }
 0x1b7   :  { %v976_v39 = vpop.eup %975  ;;  %661 = vadd.xlane.f32.xlu0 %v974_v56  ;;  %v754_v59 = vmul.f32 %v974_v56, %v945_v18  ;;  %v463_v34 = vmul.f32 1.442695, %v1842_v31  ;;  %v469_v9 = vmul.f32 1.442695, %v1845_v1 }
 0x1b8   :  { %663 = vadd.xlane.f32.xlu1 %v976_v39  ;;  %v755_v3 = vmul.f32 %v976_v39, %v945_v18  ;;  %991 = vpow2.f32 %v455_v19 }
 0x1b9   :  { %993 = vpow2.f32 %v457_v24  ;;  %v616_v24 = vld [vmem:[#allocation3 + $0x48] sm:$0xff] }
 0x1ba   :  { %v978_v47 = vpop.eup %977  ;;  %995 = vpow2.f32 %v459_v25 }
 0x1bb   :  { %v980_v44 = vpop.eup %979  ;;  %665 = vadd.xlane.f32.xlu0 %v978_v47  ;;  %v756_v46 = vmul.f32 %v978_v47, %v945_v18  ;;  %997 = vpow2.f32 %v461_v30  ;;  %v617_v30 = vld [vmem:[#allocation3 + $0x50] sm:$0xff] }
 0x1bc   :  { %667 = vadd.xlane.f32.xlu1 %v980_v44  ;;  %v757_v49 = vmul.f32 %v980_v44, %v945_v18  ;;  %999 = vpow2.f32 %v463_v34 }
 0x1bd   :  { %1001 = vpow2.f32 %v465_v42 }
 0x1be   :  { %v982_v36 = vpop.eup %981  ;;  %1003 = vpow2.f32 %v467_v52 }
 0x1bf   :  { %669 = vadd.xlane.f32.xlu0 %v982_v36  ;;  %v758_v6 = vmul.f32 %v982_v36, %v945_v18  ;;  %v1595_v32 = vpop.eup %983  ;;  %v610_v36 = vld [vmem:[#allocation3 + $0x18] sm:$0xff]  ;;  %1005 = vpow2.f32 %v469_v9 }
 0x1c0   :  { %759 = vadd.xlane.f32.xlu1 %v743_v37  ;;  %v623_v41 = vmul.f32 %v1595_v32, %v607_v38  ;;  %v1604_v48 = vpop.eup %985  ;;  %1007 = vpow2.f32 %v471_v7 }
 0x1c1   :  { %v625_v39 = vmul.f32 %v1604_v48, %v609_v17  ;;  %v619_v17 = vld [vmem:[#allocation3 + $0x60] sm:$0xff] }
 0x1c2   :  { %v1609_v56 = vpop.eup %987 }
 0x1c3   :  { %761 = vadd.xlane.f32.xlu0 %v744_v14  ;;  %v1616_v47 = vpop.eup %989  ;;  %v624_v44 = vmul.f32 %v1609_v56, %v608_v60 }
 0x1c4   :  { %763 = vadd.xlane.f32.xlu1 %v745_v54  ;;  %v626_v10 = vmul.f32 %v1616_v47, %v610_v36  ;;  %v621_v36 = vld [vmem:[#allocation3 + $0x70] sm:$0xff] }
 0x1c5   :  { %v1622_v37 = vpop.eup %991 }
 0x1c6   :  { %v1629_v20 = vpop.eup %993 }
 0x1c7   :  { %765 = vadd.xlane.f32.xlu0 %v746_v55  ;;  %v1847_v55 = vsub.f32 %v1510_v35, %v1526_v4 }
 0x1c8   :  { %767 = vadd.xlane.f32.xlu1 %v747_v61 }
 0x1c9   :  { %v473_v61 = vmul.f32 1.442695, %v1847_v55 }
 0x1cb   :  { %769 = vadd.xlane.f32.xlu0 %v748_v2  ;;  %v1848_v2 = vsub.f32 %v1508_v27, %v1523_v58  ;;  %1009 = vpow2.f32 %v473_v61 }
 0x1cc   :  { %771 = vadd.xlane.f32.xlu1 %v749_v15 }
 0x1cd   :  { %v475_v15 = vmul.f32 1.442695, %v1848_v2 }
 0x1cf   :  { %773 = vadd.xlane.f32.xlu0 %v750_v0  ;;  %v627_v0 = vmul.f32 %v1622_v37, %v611_v26  ;;  %1011 = vpow2.f32 %v475_v15 }
 0x1d0   :  { %775 = vadd.xlane.f32.xlu1 %v751_v8 }
 0x1d3   :  { %777 = vadd.xlane.f32.xlu0 %v752_v43  ;;  %v612_v43 = vld [vmem:[#allocation3 + $0x28] sm:$0xff] }
 0x1d4   :  { %779 = vadd.xlane.f32.xlu1 %v753_v53  ;;  %v1636_v53 = vpop.eup %995  ;;  %v628_v27 = vmul.f32 %v1629_v20, %v612_v43 }
 0x1d5   :  { %v1643_v58 = vpop.eup %997 }
 0x1d6   :  { %v1647_v45 = vpop.eup %999 }
 0x1d7   :  { %781 = vadd.xlane.f32.xlu0 %v754_v59  ;;  %v613_v59 = vld [vmem:[#allocation3 + $0x30] sm:$0xff]  ;;  %v1651_v16 = vpop.eup %1001  ;;  %v631_v19 = vmul.f32 %v1647_v45, %v615_v28 }
 0x1d8   :  { %783 = vadd.xlane.f32.xlu1 %v755_v3  ;;  %v1655_v23 = vpop.eup %1003  ;;  %v632_v34 = vmul.f32 %v1651_v16, %v616_v24 }
 0x1d9   :  { %v1659_v38 = vpop.eup %1005  ;;  %v633_v40 = vmul.f32 %v1655_v23, %v617_v30 }
 0x1da   :  { %v1663_v50 = vpop.eup %1007 }
 0x1db   :  { %785 = vadd.xlane.f32.xlu0 %v756_v46  ;;  %v1849_v46 = vsub.f32 %v1528_v5, %v1541_v57  ;;  %v630_v57 = vmul.f32 %v1643_v58, %v614_v11  ;;  %v1667_v1 = vpop.eup %1009  ;;  %v635_v9 = vmul.f32 %v1663_v50, %v619_v17 }
 0x1dc   :  { %787 = vadd.xlane.f32.xlu1 %v757_v49  ;;  %v1671_v7 = vpop.eup %1011  ;;  %v636_v26 = vmul.f32 %v1667_v1, %v620_v63  ;;  %v711_v63 = vld [vmem:[#allocation4 + $0x38] sm:$0xff] }
 0x1dd   :  { %v477_v49 = vmul.f32 1.442695, %v1849_v46  ;;  %v637_v55 = vmul.f32 %v1671_v7, %v621_v36  ;;  %v705_v46 = vld [vmem:[#allocation4 + $0x8] sm:$0xff]  ;;  %v712_v36 = vld [vmem:[#allocation4 + $0x40] sm:$0xff] }
 0x1df   :  { %789 = vadd.xlane.f32.xlu0 %v758_v6  ;;  %v629_v6 = vmul.f32 %v1636_v53, %v613_v59  ;;  %1013 = vpow2.f32 %v477_v49 }
 0x228   :  { %v640_v62 = vpop.xlane.xlu0 %639 }
 0x229   :  { %v671_v51 = vadd.f32 %v640_v62, %v623_v41  ;;  %v618_v41 = vld [vmem:[#allocation3 + $0x58] sm:$0xff] }
 0x22a   :  { %v634_v60 = vmul.f32 %v1659_v38, %v618_v41 }
 0x22b   :  { %688 = vst.msk [vmem:[#allocation3] sm:$0xff] %vm27_vm0, %v671_v51 }
 0x22c   :  { %v644_v18 = vpop.xlane.xlu0 %643 }
 0x22d   :  { %v642_v14 = vpop.xlane.xlu1 %641  ;;  %v673_v13 = vadd.f32 %v644_v18, %v625_v39 }
 0x22e   :  { %v672_v54 = vadd.f32 %v642_v14, %v624_v44 }
 0x22f   :  { %690 = vst.msk [vmem:[#allocation3 + $0x10] sm:$0xff] %vm27_vm0, %v673_v13 }
 0x230   :  { %689 = vst.msk [vmem:[#allocation3 + $0x8] sm:$0xff] %vm27_vm0, %v672_v54  ;;  %v646_v8 = vpop.xlane.xlu0 %645  ;;  %v1675_v54 = vpop.eup %1013 }
 0x231   :  { %v648_v35 = vpop.xlane.xlu1 %647  ;;  %v674_v4 = vadd.f32 %v646_v8, %v626_v10  ;;  %v622_v10 = vld [vmem:[#allocation3 + $0x78] sm:$0xff] }
 0x232   :  { %v675_v3 = vadd.f32 %v648_v35, %v627_v0  ;;  %v858_v13 = vld [vmem:[#allocation3] sm:$0xff] }
 0x233   :  { %691 = vst.msk [vmem:[#allocation3 + $0x18] sm:$0xff] %vm27_vm0, %v674_v4  ;;  %v704_v0 = vld [vmem:[#allocation4] sm:$0xff]  ;;  %1015 = vrcp.f32 %v858_v13  ;;  %v638_v4 = vmul.f32 %v1675_v54, %v622_v10 }
 0x234   :  { %692 = vst.msk [vmem:[#allocation3 + $0x20] sm:$0xff] %vm27_vm0, %v675_v3  ;;  %v650_v12 = vpop.xlane.xlu0 %649  ;;  %v720_v59 = vmul.f32 %v1595_v32, %v704_v0  ;;  %v707_v32 = vld [vmem:[#allocation4 + $0x18] sm:$0xff] }
 0x235   :  { %v652_v22 = vpop.xlane.xlu1 %651  ;;  %v676_v33 = vadd.f32 %v650_v12, %v628_v27  ;;  %v723_v30 = vmul.f32 %v1616_v47, %v707_v32 }
 0x236   :  { %v677_v5 = vadd.f32 %v652_v22, %v629_v6  ;;  %v860_v35 = vld [vmem:[#allocation3 + $0x10] sm:$0xff] }
 0x237   :  { %693 = vst.msk [vmem:[#allocation3 + $0x28] sm:$0xff] %vm27_vm0, %v676_v33  ;;  %v859_v8 = vld [vmem:[#allocation3 + $0x8] sm:$0xff]  ;;  %v706_v6 = vld [vmem:[#allocation4 + $0x10] sm:$0xff]  ;;  %v721_v33 = vmul.f32 %v1609_v56, %v705_v46 }
 0x238   :  { %694 = vst.msk [vmem:[#allocation3 + $0x30] sm:$0xff] %vm27_vm0, %v677_v5  ;;  %v654_v21 = vpop.xlane.xlu0 %653  ;;  %1017 = vrcp.f32 %v859_v8  ;;  %v722_v28 = vmul.f32 %v1604_v48, %v706_v6  ;;  %v709_v48 = vld [vmem:[#allocation4 + $0x28] sm:$0xff]  ;;  %v728_v8 = vmul.f32 %v1647_v45, %v712_v36  ;;  %v714_v46 = vld [vmem:[#allocation4 + $0x50] sm:$0xff] }
 0x239   :  { %v656_v25 = vpop.xlane.xlu1 %655  ;;  %v678_v29 = vadd.f32 %v654_v21, %v630_v57  ;;  %1019 = vrcp.f32 %v860_v35  ;;  %v708_v21 = vld [vmem:[#allocation4 + $0x20] sm:$0xff]  ;;  %v713_v35 = vld [vmem:[#allocation4 + $0x48] sm:$0xff]  ;;  %v730_v32 = vmul.f32 %v1655_v23, %v714_v46 }
 0x23a   :  { %v679_v31 = vadd.f32 %v656_v25, %v631_v19  ;;  %v861_v12 = vld [vmem:[#allocation3 + $0x18] sm:$0xff]  ;;  %v724_v56 = vmul.f32 %v1622_v37, %v708_v21  ;;  %v725_v37 = vmul.f32 %v1629_v20, %v709_v48 }
 0x23b   :  { %695 = vst.msk [vmem:[#allocation3 + $0x38] sm:$0xff] %vm27_vm0, %v678_v29  ;;  %v862_v22 = vld [vmem:[#allocation3 + $0x20] sm:$0xff]  ;;  %1021 = vrcp.f32 %v861_v12 }
 0x23c   :  { %696 = vst.msk [vmem:[#allocation3 + $0x40] sm:$0xff] %vm27_vm0, %v679_v31  ;;  %v658_v42 = vpop.xlane.xlu0 %657  ;;  %1023 = vrcp.f32 %v862_v22 }
 0x23d   :  { %v660_v52 = vpop.xlane.xlu1 %659  ;;  %v680_v62 = vadd.f32 %v658_v42, %v632_v34  ;;  %v710_v42 = vld [vmem:[#allocation4 + $0x30] sm:$0xff] }
 0x23e   :  { %v681_v51 = vadd.f32 %v660_v52, %v633_v40  ;;  %v863_v24 = vld [vmem:[#allocation3 + $0x28] sm:$0xff] }
 0x23f   :  { %697 = vst.msk [vmem:[#allocation3 + $0x48] sm:$0xff] %vm27_vm0, %v680_v62  ;;  %v864_v29 = vld [vmem:[#allocation3 + $0x30] sm:$0xff]  ;;  %1025 = vrcp.f32 %v863_v24 }
 0x240   :  { %698 = vst.msk [vmem:[#allocation3 + $0x50] sm:$0xff] %vm27_vm0, %v681_v51  ;;  %v662_v39 = vpop.xlane.xlu0 %661  ;;  %1027 = vrcp.f32 %v864_v29  ;;  %v1016_v62 = vpop.eup %1015  ;;  %v1694_v51 = vstv %s1804_s4  ;;  %v716_v29 = vld [vmem:[#allocation4 + $0x60] sm:$0xff] }
 0x241   :  { %v664_v44 = vpop.xlane.xlu1 %663  ;;  %v682_v18 = vadd.f32 %v662_v39, %v634_v60 }
 0x242   :  { %v683_v14 = vadd.f32 %v664_v44, %v635_v9  ;;  %v865_v41 = vld [vmem:[#allocation3 + $0x38] sm:$0xff]  ;;  %v726_v9 = vmul.f32 %v1636_v53, %v710_v42  ;;  %v727_v53 = vmul.f32 %v1643_v58, %v711_v63 }
 0x243   :  { %699 = vst.msk [vmem:[#allocation3 + $0x58] sm:$0xff] %vm27_vm0, %v682_v18  ;;  %v866_v17 = vld [vmem:[#allocation3 + $0x40] sm:$0xff]  ;;  %1029 = vrcp.f32 %v865_v41 }
 0x244   :  { %700 = vst.msk [vmem:[#allocation3 + $0x60] sm:$0xff] %vm27_vm0, %v683_v14  ;;  %v666_v61 = vpop.xlane.xlu0 %665  ;;  %1031 = vrcp.f32 %v866_v17 }
 0x245   :  { %v668_v2 = vpop.xlane.xlu1 %667  ;;  %v684_v15 = vadd.f32 %v666_v61, %v636_v26  ;;  %v1018_v14 = vpop.eup %1017 }
 0x246   :  { %v685_v43 = vadd.f32 %v668_v2, %v637_v55  ;;  %v867_v13 = vld [vmem:[#allocation3 + $0x48] sm:$0xff]  ;;  %v1020_v10 = vpop.eup %1019 }
 0x247   :  { %701 = vst.msk [vmem:[#allocation3 + $0x68] sm:$0xff] %vm27_vm0, %v684_v15  ;;  %v868_v20 = vld [vmem:[#allocation3 + $0x50] sm:$0xff]  ;;  %1033 = vrcp.f32 %v867_v13 }
 0x248   :  { %702 = vst.msk [vmem:[#allocation3 + $0x70] sm:$0xff] %vm27_vm0, %v685_v43  ;;  %v670_v3 = vpop.xlane.xlu0 %669  ;;  %1035 = vrcp.f32 %v868_v20  ;;  %v719_v20 = vld [vmem:[#allocation4 + $0x78] sm:$0xff] }
 0x249   :  { %v760_v49 = vpop.xlane.xlu1 %759  ;;  %v686_v27 = vadd.f32 %v670_v3, %v638_v4 }
 0x24a   :  { %v791_v11 = vadd.f32 %v760_v49, %v720_v59  ;;  %v1022_v49 = vpop.eup %1021  ;;  %v869_v58 = vld [vmem:[#allocation3 + $0x58] sm:$0xff] }
 0x24b   :  { %703 = vst.msk [vmem:[#allocation3 + $0x78] sm:$0xff] %vm27_vm0, %v686_v27  ;;  %v870_v22 = vld [vmem:[#allocation3 + $0x60] sm:$0xff]  ;;  %1037 = vrcp.f32 %v869_v58 }
 0x24c   :  { %807 = vst.msk [vmem:[#allocation4] sm:$0xff] %vm27_vm0, %v791_v11  ;;  %v762_v5 = vpop.xlane.xlu0 %761  ;;  %v1024_v11 = vpop.eup %1023  ;;  %1039 = vrcp.f32 %v870_v22 }
 0x24d   :  { %v764_v57 = vpop.xlane.xlu1 %763  ;;  %v792_v19 = vadd.f32 %v762_v5, %v721_v33 }
 0x24e   :  { %v793_v25 = vadd.f32 %v764_v57, %v722_v28  ;;  %v729_v28 = vmul.f32 %v1651_v16, %v713_v35  ;;  %v871_v16 = vld [vmem:[#allocation3 + $0x68] sm:$0xff] }
 0x24f   :  { %808 = vst.msk [vmem:[#allocation4 + $0x8] sm:$0xff] %vm27_vm0, %v792_v19  ;;  %v715_v19 = vld [vmem:[#allocation4 + $0x58] sm:$0xff]  ;;  %1041 = vrcp.f32 %v871_v16 }
 0x250   :  { %809 = vst.msk [vmem:[#allocation4 + $0x10] sm:$0xff] %vm27_vm0, %v793_v25  ;;  %v766_v31 = vpop.xlane.xlu0 %765  ;;  %v731_v41 = vmul.f32 %v1659_v38, %v715_v19 }
 0x251   :  { %v768_v34 = vpop.xlane.xlu1 %767  ;;  %v794_v40 = vadd.f32 %v766_v31, %v723_v30  ;;  %v1026_v30 = vpop.eup %1025 }
 0x252   :  { %v795_v52 = vadd.f32 %v768_v34, %v724_v56  ;;  %v1028_v34 = vpop.eup %1027  ;;  %v873_v38 = vld [vmem:[#allocation3 + $0x78] sm:$0xff] }
 0x253   :  { %v842_v47 = vld [vmem:[#allocation4] sm:$0xff]  ;;  %810 = vst.msk [vmem:[#allocation4 + $0x18] sm:$0xff] %vm27_vm0, %v794_v40  ;;  %v872_v40 = vld [vmem:[#allocation3 + $0x70] sm:$0xff]  ;;  %v1030_v63 = vpop.eup %1029 }
 0x254   :  { %v890_v60 = vmul.f32 %v1016_v62, %v842_v47  ;;  %811 = vst.msk [vmem:[#allocation4 + $0x20] sm:$0xff] %vm27_vm0, %v795_v52  ;;  %v770_v39 = vpop.xlane.xlu0 %769  ;;  %v732_v62 = vmul.f32 %v1663_v50, %v716_v29  ;;  %v717_v47 = vld [vmem:[#allocation4 + $0x68] sm:$0xff]  ;;  %1043 = vrcp.f32 %v872_v40 }
 0x255   :  { %v772_v44 = vpop.xlane.xlu1 %771  ;;  %v796_v18 = vadd.f32 %v770_v39, %v725_v37  ;;  %v718_v39 = vld [vmem:[#allocation4 + $0x70] sm:$0xff]  ;;  %1045 = vrcp.f32 %v873_v38 }
 0x256   :  { %v908_v26 = vadd.f32 %v1694_v51, %v890_v60  ;;  %v843_v55 = vld [vmem:[#allocation4 + $0x8] sm:$0xff]  ;;  %v797_v61 = vadd.f32 %v772_v44, %v726_v9 }
 0x257   :  { %v844_v2 = vld [vmem:[#allocation4 + $0x10] sm:$0xff]  ;;  %v891_v15 = vmul.f32 %v1018_v14, %v843_v55  ;;  %812 = vst.msk [vmem:[#allocation4 + $0x28] sm:$0xff] %vm27_vm0, %v796_v18  ;;  %v1032_v14 = vpop.eup %1031 }
 0x258   :  { %924 = vst.msk [vmem:[%s1805_s5] sm:$0xff] %vm27_vm0, %v908_v26  ;;  %v892_v0 = vmul.f32 %v1020_v10, %v844_v2  ;;  %813 = vst.msk [vmem:[#allocation4 + $0x30] sm:$0xff] %vm27_vm0, %v797_v61  ;;  %v774_v43 = vpop.xlane.xlu0 %773  ;;  %v733_v26 = vmul.f32 %v1667_v1, %v717_v47  ;;  %v734_v61 = vmul.f32 %v1671_v7, %v718_v39 }
 0x259   :  { %v909_v4 = vadd.f32 %v1694_v51, %v891_v15  ;;  %v776_v59 = vpop.xlane.xlu1 %775  ;;  %v798_v3 = vadd.f32 %v774_v43, %v727_v53 }
 0x25a   :  { %v910_v27 = vadd.f32 %v1694_v51, %v892_v0  ;;  %v845_v6 = vld [vmem:[#allocation4 + $0x18] sm:$0xff]  ;;  %v799_v12 = vadd.f32 %v776_v59, %v728_v8  ;;  %v1034_v0 = vpop.eup %1033  ;;  %v735_v59 = vmul.f32 %v1675_v54, %v719_v20 }
 0x25b   :  { %925 = vst.msk [vmem:[%s1805_s5 + $0x8] sm:$0xff] %vm27_vm0, %v909_v4  ;;  %v846_v45 = vld [vmem:[#allocation4 + $0x20] sm:$0xff]  ;;  %v893_v33 = vmul.f32 %v1022_v49, %v845_v6  ;;  %814 = vst.msk [vmem:[#allocation4 + $0x38] sm:$0xff] %vm27_vm0, %v798_v3  ;;  %v1036_v35 = vpop.eup %1035 }
 0x25c   :  { %926 = vst.msk [vmem:[%s1805_s5 + $0x10] sm:$0xff] %vm27_vm0, %v910_v27  ;;  %v894_v5 = vmul.f32 %v1024_v11, %v846_v45  ;;  %815 = vst.msk [vmem:[#allocation4 + $0x40] sm:$0xff] %vm27_vm0, %v799_v12  ;;  %v778_v57 = vpop.xlane.xlu0 %777  ;;  %v1038_v27 = vpop.eup %1037 }
 0x25d   :  { %v911_v21 = vadd.f32 %v1694_v51, %v893_v33  ;;  %v780_v24 = vpop.xlane.xlu1 %779  ;;  %v800_v25 = vadd.f32 %v778_v57, %v729_v28  ;;  %v1040_v11 = vpop.eup %1039 }
 0x25e   :  { %v912_v56 = vadd.f32 %v1694_v51, %v894_v5  ;;  %v847_v31 = vld [vmem:[#allocation4 + $0x28] sm:$0xff]  ;;  %v801_v48 = vadd.f32 %v780_v24, %v730_v32  ;;  %v1042_v28 = vpop.eup %1041 }
 0x25f   :  { %927 = vst.msk [vmem:[%s1805_s5 + $0x18] sm:$0xff] %vm27_vm0, %v911_v21  ;;  %v848_v23 = vld [vmem:[#allocation4 + $0x30] sm:$0xff]  ;;  %v895_v42 = vmul.f32 %v1026_v30, %v847_v31  ;;  %816 = vst.msk [vmem:[#allocation4 + $0x48] sm:$0xff] %vm27_vm0, %v800_v25 }
 0x260   :  { %928 = vst.msk [vmem:[%s1805_s5 + $0x20] sm:$0xff] %vm27_vm0, %v912_v56  ;;  %v896_v52 = vmul.f32 %v1028_v34, %v848_v23  ;;  %817 = vst.msk [vmem:[#allocation4 + $0x50] sm:$0xff] %vm27_vm0, %v801_v48  ;;  %v782_v17 = vpop.xlane.xlu0 %781 }
 0x261   :  { %v913_v37 = vadd.f32 %v1694_v51, %v895_v42  ;;  %v784_v60 = vpop.xlane.xlu1 %783  ;;  %v802_v9 = vadd.f32 %v782_v17, %v731_v41  ;;  %v1044_v57 = vpop.eup %1043 }
 0x262   :  { %v914_v44 = vadd.f32 %v1694_v51, %v896_v52  ;;  %v849_v18 = vld [vmem:[#allocation4 + $0x38] sm:$0xff]  ;;  %v803_v36 = vadd.f32 %v784_v60, %v732_v62  ;;  %v1046_v29 = vpop.eup %1045 }
 0x263   :  { %929 = vst.msk [vmem:[%s1805_s5 + $0x28] sm:$0xff] %vm27_vm0, %v913_v37  ;;  %v850_v50 = vld [vmem:[#allocation4 + $0x40] sm:$0xff]  ;;  %v897_v13 = vmul.f32 %v1030_v63, %v849_v18  ;;  %818 = vst.msk [vmem:[#allocation4 + $0x58] sm:$0xff] %vm27_vm0, %v802_v9 }
 0x264   :  { %930 = vst.msk [vmem:[%s1805_s5 + $0x30] sm:$0xff] %vm27_vm0, %v914_v44  ;;  %v898_v55 = vmul.f32 %v1032_v14, %v850_v50  ;;  %819 = vst.msk [vmem:[#allocation4 + $0x60] sm:$0xff] %vm27_vm0, %v803_v36  ;;  %v786_v10 = vpop.xlane.xlu0 %785 }
 0x265   :  { %v915_v2 = vadd.f32 %v1694_v51, %v897_v13  ;;  %v788_v15 = vpop.xlane.xlu1 %787  ;;  %v804_v53 = vadd.f32 %v786_v10, %v733_v26 }
 0x266   :  { %v916_v1 = vadd.f32 %v1694_v51, %v898_v55  ;;  %v851_v8 = vld [vmem:[#allocation4 + $0x48] sm:$0xff]  ;;  %v805_v43 = vadd.f32 %v788_v15, %v734_v61 }
 0x267   :  { %931 = vst.msk [vmem:[%s1805_s5 + $0x38] sm:$0xff] %vm27_vm0, %v915_v2  ;;  %v852_v4 = vld [vmem:[#allocation4 + $0x50] sm:$0xff]  ;;  %v899_v7 = vmul.f32 %v1034_v0, %v851_v8  ;;  %820 = vst.msk [vmem:[#allocation4 + $0x68] sm:$0xff] %vm27_vm0, %v804_v53 }
 0x268   :  { %932 = vst.msk [vmem:[%s1805_s5 + $0x40] sm:$0xff] %vm27_vm0, %v916_v1  ;;  %v900_v3 = vmul.f32 %v1036_v35, %v852_v4  ;;  %821 = vst.msk [vmem:[#allocation4 + $0x70] sm:$0xff] %vm27_vm0, %v805_v43  ;;  %v790_v46 = vpop.xlane.xlu0 %789 }
 0x269   :  { %v917_v49 = vadd.f32 %v1694_v51, %v899_v7  ;;  %v806_v58 = vadd.f32 %v790_v46, %v735_v59 }
 0x26a   :  { %v918_v6 = vadd.f32 %v1694_v51, %v900_v3  ;;  %v853_v12 = vld [vmem:[#allocation4 + $0x58] sm:$0xff] }
 0x26b   :  { %933 = vst.msk [vmem:[%s1805_s5 + $0x48] sm:$0xff] %vm27_vm0, %v917_v49  ;;  %v854_v54 = vld [vmem:[#allocation4 + $0x60] sm:$0xff]  ;;  %v901_v22 = vmul.f32 %v1038_v27, %v853_v12  ;;  %822 = vst.msk [vmem:[#allocation4 + $0x78] sm:$0xff] %vm27_vm0, %v806_v58 }
 0x26c   :  { %934 = vst.msk [vmem:[%s1805_s5 + $0x50] sm:$0xff] %vm27_vm0, %v918_v6  ;;  %v902_v45 = vmul.f32 %v1040_v11, %v854_v54 }
 0x26d   :  { %v919_v33 = vadd.f32 %v1694_v51, %v901_v22 }
 0x26e   :  { %v920_v5 = vadd.f32 %v1694_v51, %v902_v45  ;;  %v855_v32 = vld [vmem:[#allocation4 + $0x68] sm:$0xff] }
 0x26f   :  { %935 = vst.msk [vmem:[%s1805_s5 + $0x58] sm:$0xff] %vm27_vm0, %v919_v33  ;;  %v856_v19 = vld [vmem:[#allocation4 + $0x70] sm:$0xff]  ;;  %v903_v21 = vmul.f32 %v1042_v28, %v855_v32 }
 0x270   :  { %936 = vst.msk [vmem:[%s1805_s5 + $0x60] sm:$0xff] %vm27_vm0, %v920_v5  ;;  %v904_v24 = vmul.f32 %v1044_v57, %v856_v19 }
 0x271   :  { %v921_v25 = vadd.f32 %v1694_v51, %v903_v21 }
 0x272   :  { %v922_v30 = vadd.f32 %v1694_v51, %v904_v24  ;;  %v857_v16 = vld [vmem:[#allocation4 + $0x78] sm:$0xff] }
 0x273   :  { %937 = vst.msk [vmem:[%s1805_s5 + $0x68] sm:$0xff] %vm27_vm0, %v921_v25  ;;  %v905_v56 = vmul.f32 %v1046_v29, %v857_v16 }
 0x274   :  { %938 = vst.msk [vmem:[%s1805_s5 + $0x70] sm:$0xff] %vm27_vm0, %v922_v30 }
 0x275   :  { %v923_v31 = vadd.f32 %v1694_v51, %v905_v56 }
 0x277   :  { %939 = vst.msk [vmem:[%s1805_s5 + $0x78] sm:$0xff] %vm27_vm0, %v923_v31 }

</bundles_post_ra>
